<compile_context>
chip_gen: v7x
topology: tpu7x:2x2x1
jax: 0.10.0
libtpu: 0.0.40
codegen_flags: <defaults>
</compile_context>

<pallas_src>
import jax
import jax.numpy as jnp
import numpy as np
from jax.experimental import pallas as pl
from jax.experimental.pallas import tpu as pltpu

KERNEL_SIZE = 3
STRIDE = 2
PAD = 1


def _downsample_conv2x2_kernel(x_ref, w_ref, b_ref, o_ref):
    """One (batch, row-tile) block per grid step.

    x_ref: (1, tho+1, Wo+1, 4*C)  space-to-depth input window (compute dtype)
    w_ref: (4, 4*C, C)            2x2-tap weights (compute dtype)
    b_ref: (1, C)                 bias (float32)
    o_ref: (1, tho*Wo, C)         output slab
    """
    _, _, C = o_ref.shape
    _, hin, win, c4 = x_ref.shape
    tho = hin - 1
    wo = win - 1

    x = x_ref[0]  # (tho+1, Wo+1, 4C)

    # f32 accumulator initialized with the broadcast bias (saves one VPU pass).
    acc = jnp.broadcast_to(b_ref[...].astype(jnp.float32), (tho * wo, C))

    # 2x2 stride-1 conv == 4 matmuls with a 4C-deep contraction on the MXU.
    # Taps are plain (unstrided) +0/+1 shifts along H and W.
    for dy in range(2):
        for dx in range(2):
            patch = x[dy:dy + tho, dx:dx + wo, :]          # (tho, Wo, 4C)
            lhs = patch.reshape(tho * wo, c4)
            acc = acc + jnp.dot(lhs, w_ref[2 * dy + dx],
                                preferred_element_type=jnp.float32)

    o_ref[0] = acc.astype(o_ref.dtype)


def _pick_row_tile(ho, wo, c4, itemsize, max_block_bytes=4 << 20):
    """Largest divisor of `ho` whose (tho+1, Wo+1, 4C) window fits the budget.

    Also keeps the output block's sublane dim (tho*Wo) a multiple of 8 when the
    row axis is actually tiled (nt > 1), per the (8, 128) BlockSpec rule.
    """
    valid = [d for d in range(1, ho + 1)
             if ho % d == 0 and (ho // d == 1 or (d * wo) % 8 == 0)]
    fitting = [d for d in valid
               if (d + 1) * (wo + 1) * c4 * itemsize <= max_block_bytes]
    return max(fitting) if fitting else min(valid)


def downsample_block2d(x_nchw, weight_oihw, bias, *,
                       compute_dtype=jnp.bfloat16, row_tile=None):
    """Forward pass of DownSampleBlock2D.

    x_nchw:      (B, C, H, W)
    weight_oihw: (C, C, 3, 3)   PyTorch Conv2d layout
    bias:        (C,)
    returns:     (B, C, H//2, W//2)  in x_nchw.dtype
    """
    B, C, H, W = x_nchw.shape
    assert weight_oihw.shape == (C, C, KERNEL_SIZE, KERNEL_SIZE)
    assert H % STRIDE == 0 and W % STRIDE == 0, "needs even H and W"
    Ho, Wo = H // STRIDE, W // STRIDE
    C4 = 4 * C
    out_dtype = x_nchw.dtype

    # ---- wrapper-side layout plumbing (fuses into one XLA repack pass) ----
    x = jnp.transpose(x_nchw, (0, 2, 3, 1)).astype(compute_dtype)      # NHWC
    x = jnp.pad(x, ((0, 0), (PAD, PAD), (PAD, PAD), (0, 0)))
    # 2x2 space-to-depth: (B, Ho+1, Wo+1, 4C); stride-2 conv -> stride-1 2x2.
    x = x.reshape(B, Ho + 1, 2, Wo + 1, 2, C)
    x = jnp.transpose(x, (0, 1, 3, 2, 4, 5)).reshape(B, Ho + 1, Wo + 1, C4)

    # Overlapping row windows so each grid step is a self-contained block.
    tho = row_tile if row_tile is not None else _pick_row_tile(
        Ho, Wo, C4, jnp.dtype(compute_dtype).itemsize)
    assert Ho % tho == 0
    nt = Ho // tho
    x_tiles = jnp.stack(
        [x[:, t * tho: t * tho + tho + 1] for t in range(nt)], axis=1)
    x_tiles = x_tiles.reshape(B * nt, tho + 1, Wo + 1, C4)

    # Weights: (Cout, Cin, 3, 3) -> 4 taps of (4*Cin, Cout) matching s2d order.
    # Tap (dy, dx) holds original taps (ky=2*dy+py, kx=2*dx+px); unused (1,1)
    # parity slots stay zero.
    w_t = jnp.transpose(weight_oihw, (2, 3, 1, 0))       # (ky, kx, cin, cout)
    w6 = jnp.zeros((2, 2, 2, 2, C, C), compute_dtype)    # [dy,dx,py,px,ci,co]
    for ky in range(KERNEL_SIZE):
        for kx in range(KERNEL_SIZE):
            w6 = w6.at[ky // 2, kx // 2, ky % 2, kx % 2].set(
                w_t[ky, kx].astype(compute_dtype))
    w4 = w6.reshape(4, C4, C)
    b2 = bias.reshape(1, C).astype(jnp.float32)

    out_flat = pl.pallas_call(
        _downsample_conv2x2_kernel,
        out_shape=jax.ShapeDtypeStruct((B * nt, tho * Wo, C), out_dtype),
        grid=(B * nt,),
        in_specs=[
            pl.BlockSpec((1, tho + 1, Wo + 1, C4), lambda i: (i, 0, 0, 0)),
            pl.BlockSpec((4, C4, C), lambda i: (0, 0, 0)),
            pl.BlockSpec((1, C), lambda i: (0, 0)),
        ],
        out_specs=pl.BlockSpec((1, tho * Wo, C), lambda i: (i, 0, 0)),
        compiler_params=pltpu.CompilerParams(
            dimension_semantics=("parallel",)),
    )(x_tiles, w4, b2)

    out_nhwc = out_flat.reshape(B, Ho, Wo, C)
    return jnp.transpose(out_nhwc, (0, 3, 1, 2))          # back to NCHW


def _reference_conv(x, weight, bias):
    return jax.lax.conv_general_dilated(
        x, weight, window_strides=(STRIDE, STRIDE),
        padding=((PAD, PAD), (PAD, PAD)),
        dimension_numbers=("NCHW", "OIHW", "NCHW"),
    ) + bias[None, :, None, None]


if __name__ == "__main__":
    key = jax.random.PRNGKey(0)
    k_x, k_w, k_b, k_x2, k_w2, k_b2 = jax.random.split(key, 6)

    # --- main test shape (matches the module's toy config) ---
    B, C, H, W = 2, 4, 16, 16
    x = jax.random.normal(k_x, (B, C, H, W), dtype=jnp.float32)
    fan_in = C * KERNEL_SIZE * KERNEL_SIZE
    bound = 1.0 / np.sqrt(fan_in)
    weight = jax.random.uniform(k_w, (C, C, KERNEL_SIZE, KERNEL_SIZE),
                                minval=-bound, maxval=bound, dtype=jnp.float32)
    bias = jax.random.uniform(k_b, (C,), minval=-bound, maxval=bound,
                              dtype=jnp.float32)

    ref = _reference_conv(x, weight, bias)

    # f32 compute path: tight check against the XLA reference conv.
    out_f32 = jax.block_until_ready(
        downsample_block2d(x, weight, bias, compute_dtype=jnp.float32))
    np.testing.assert_allclose(np.asarray(out_f32), np.asarray(ref),
                               rtol=1e-5, atol=1e-5)
    assert out_f32.shape == (B, C, H // STRIDE, W // STRIDE)

    # Default bf16 compute path (halves HBM traffic, doubles MXU rate): loose check.
    out_bf16 = jax.block_until_ready(downsample_block2d(x, weight, bias))
    np.testing.assert_allclose(np.asarray(out_bf16), np.asarray(ref),
                               rtol=5e-2, atol=5e-2)

    # --- second shape exercising the row-tiled (nt > 1) path ---
    B2, C2, H2, W2 = 2, 8, 32, 32
    x2 = jax.random.normal(k_x2, (B2, C2, H2, W2), dtype=jnp.float32)
    bound2 = 1.0 / np.sqrt(C2 * KERNEL_SIZE * KERNEL_SIZE)
    weight2 = jax.random.uniform(k_w2, (C2, C2, KERNEL_SIZE, KERNEL_SIZE),
                                 minval=-bound2, maxval=bound2,
                                 dtype=jnp.float32)
    bias2 = jax.random.uniform(k_b2, (C2,), minval=-bound2, maxval=bound2,
                               dtype=jnp.float32)
    ref2 = _reference_conv(x2, weight2, bias2)
    out2 = jax.block_until_ready(
        downsample_block2d(x2, weight2, bias2,
                           compute_dtype=jnp.float32, row_tile=4))
    np.testing.assert_allclose(np.asarray(out2), np.asarray(ref2),
                               rtol=1e-5, atol=1e-5)

    print("KERNEL_OK")
</pallas_src>

<mosaic_0001>
module attributes {stable_mosaic.version = 11 : i64} {
  func.func @_downsample_conv2x2_kernel(%arg0: i32, %arg1: memref<1x9x9x16xf32, #tpu.memory_space<vmem>>, %arg2: memref<4x16x4xf32, #tpu.memory_space<vmem>>, %arg3: memref<1x4xf32, #tpu.memory_space<vmem>>, %arg4: memref<1x64x4xf32, #tpu.memory_space<vmem>>) attributes {dimension_semantics = [#tpu.dimension_semantics<parallel>], iteration_bounds = array<i64: 2>, scalar_prefetch = 0 : i64, scratch_operands = 0 : i64, tpu.core_type = #tpu.core_type<tc>, window_params = [{transform_indices = @transform_0, window_bounds = array<i64: 1, 9, 9, 16>}, {pipeline_mode = #tpu.pipeline_mode<synchronous>, transform_indices = @transform_1, window_bounds = array<i64: 4, 16, 4>}, {pipeline_mode = #tpu.pipeline_mode<synchronous>, transform_indices = @transform_2, window_bounds = array<i64: 1, 4>}, {transform_indices = @transform_3, window_bounds = array<i64: 1, 64, 4>}]} {
    %c0 = arith.constant 0 : index
    %c0_0 = arith.constant 0 : index
    %c0_1 = arith.constant 0 : index
    %c0_2 = arith.constant 0 : index
    %0 = vector.load %arg1[%c0, %c0_0, %c0_1, %c0_2] : memref<1x9x9x16xf32, #tpu.memory_space<vmem>>, vector<1x9x9x16xf32>
    %1 = vector.shape_cast %0 : vector<1x9x9x16xf32> to vector<9x9x16xf32>
    %c0_3 = arith.constant 0 : index
    %c0_4 = arith.constant 0 : index
    %2 = vector.load %arg3[%c0_3, %c0_4] : memref<1x4xf32, #tpu.memory_space<vmem>>, vector<1x4xf32>
    %3 = vector.shape_cast %2 : vector<1x4xf32> to vector<1x4xf32>
    %4 = vector.broadcast %3 : vector<1x4xf32> to vector<64x4xf32>
    %5 = vector.extract_strided_slice %1 {offsets = [0, 0, 0], sizes = [8, 8, 16], strides = [1, 1, 1]} : vector<9x9x16xf32> to vector<8x8x16xf32>
    %6 = vector.shape_cast %5 : vector<8x8x16xf32> to vector<64x16xf32>
    %c0_5 = arith.constant 0 : index
    %c0_6 = arith.constant 0 : index
    %c0_7 = arith.constant 0 : index
    %7 = vector.load %arg2[%c0_5, %c0_6, %c0_7] : memref<4x16x4xf32, #tpu.memory_space<vmem>>, vector<1x16x4xf32>
    %8 = vector.shape_cast %7 : vector<1x16x4xf32> to vector<16x4xf32>
    %cst = arith.constant dense<0.000000e+00> : vector<64x4xf32>
    %9 = tpu.matmul %6, %8, %cst {dimension_numbers = #tpu.dot_dimension_numbers<[1], [0], [0], [1], [0, 0, 1, 1], [], []>} : vector<64x16xf32>, vector<16x4xf32>, vector<64x4xf32> -> vector<64x4xf32>
    %10 = arith.addf %4, %9 : vector<64x4xf32>
    %11 = vector.extract_strided_slice %1 {offsets = [0, 1, 0], sizes = [8, 8, 16], strides = [1, 1, 1]} : vector<9x9x16xf32> to vector<8x8x16xf32>
    %12 = vector.shape_cast %11 : vector<8x8x16xf32> to vector<64x16xf32>
    %c1 = arith.constant 1 : index
    %c0_8 = arith.constant 0 : index
    %c0_9 = arith.constant 0 : index
    %13 = vector.load %arg2[%c1, %c0_8, %c0_9] : memref<4x16x4xf32, #tpu.memory_space<vmem>>, vector<1x16x4xf32>
    %14 = vector.shape_cast %13 : vector<1x16x4xf32> to vector<16x4xf32>
    %cst_10 = arith.constant dense<0.000000e+00> : vector<64x4xf32>
    %15 = tpu.matmul %12, %14, %cst_10 {dimension_numbers = #tpu.dot_dimension_numbers<[1], [0], [0], [1], [0, 0, 1, 1], [], []>} : vector<64x16xf32>, vector<16x4xf32>, vector<64x4xf32> -> vector<64x4xf32>
    %16 = arith.addf %10, %15 : vector<64x4xf32>
    %17 = vector.extract_strided_slice %1 {offsets = [1, 0, 0], sizes = [8, 8, 16], strides = [1, 1, 1]} : vector<9x9x16xf32> to vector<8x8x16xf32>
    %18 = vector.shape_cast %17 : vector<8x8x16xf32> to vector<64x16xf32>
    %c2 = arith.constant 2 : index
    %c0_11 = arith.constant 0 : index
    %c0_12 = arith.constant 0 : index
    %19 = vector.load %arg2[%c2, %c0_11, %c0_12] : memref<4x16x4xf32, #tpu.memory_space<vmem>>, vector<1x16x4xf32>
    %20 = vector.shape_cast %19 : vector<1x16x4xf32> to vector<16x4xf32>
    %cst_13 = arith.constant dense<0.000000e+00> : vector<64x4xf32>
    %21 = tpu.matmul %18, %20, %cst_13 {dimension_numbers = #tpu.dot_dimension_numbers<[1], [0], [0], [1], [0, 0, 1, 1], [], []>} : vector<64x16xf32>, vector<16x4xf32>, vector<64x4xf32> -> vector<64x4xf32>
    %22 = arith.addf %16, %21 : vector<64x4xf32>
    %23 = vector.extract_strided_slice %1 {offsets = [1, 1, 0], sizes = [8, 8, 16], strides = [1, 1, 1]} : vector<9x9x16xf32> to vector<8x8x16xf32>
    %24 = vector.shape_cast %23 : vector<8x8x16xf32> to vector<64x16xf32>
    %c3 = arith.constant 3 : index
    %c0_14 = arith.constant 0 : index
    %c0_15 = arith.constant 0 : index
    %25 = vector.load %arg2[%c3, %c0_14, %c0_15] : memref<4x16x4xf32, #tpu.memory_space<vmem>>, vector<1x16x4xf32>
    %26 = vector.shape_cast %25 : vector<1x16x4xf32> to vector<16x4xf32>
    %cst_16 = arith.constant dense<0.000000e+00> : vector<64x4xf32>
    %27 = tpu.matmul %24, %26, %cst_16 {dimension_numbers = #tpu.dot_dimension_numbers<[1], [0], [0], [1], [0, 0, 1, 1], [], []>} : vector<64x16xf32>, vector<16x4xf32>, vector<64x4xf32> -> vector<64x4xf32>
    %28 = arith.addf %22, %27 : vector<64x4xf32>
    %c0_17 = arith.constant 0 : index
    %c0_18 = arith.constant 0 : index
    %c0_19 = arith.constant 0 : index
    %29 = vector.load %arg4[%c0_17, %c0_18, %c0_19] : memref<1x64x4xf32, #tpu.memory_space<vmem>>, vector<1x64x4xf32>
    %30 = vector.shape_cast %29 : vector<1x64x4xf32> to vector<64x4xf32>
    %31 = vector.shape_cast %28 : vector<64x4xf32> to vector<1x64x4xf32>
    tpu.vector_store %arg4[%c0_17, %c0_18, %c0_19], %31 {strides = array<i32>} : memref<1x64x4xf32, #tpu.memory_space<vmem>>, vector<1x64x4xf32>,
    return
  }
  func.func @transform_0(%arg0: i32) -> (i32, i32, i32, i32) {
    %c0_i32 = arith.constant 0 : i32
    %c0_i32_0 = arith.constant 0 : i32
    %c0_i32_1 = arith.constant 0 : i32
    %c0_i32_2 = arith.constant 0 : i32
    return %arg0, %c0_i32, %c0_i32_0, %c0_i32_1 : i32, i32, i32, i32
  }
  func.func @transform_1(%arg0: i32) -> (i32, i32, i32) {
    %c0_i32 = arith.constant 0 : i32
    %c0_i32_0 = arith.constant 0 : i32
    %c0_i32_1 = arith.constant 0 : i32
    %c0_i32_2 = arith.constant 0 : i32
    return %c0_i32, %c0_i32_0, %c0_i32_1 : i32, i32, i32
  }
  func.func @transform_2(%arg0: i32) -> (i32, i32) {
    %c0_i32 = arith.constant 0 : i32
    %c0_i32_0 = arith.constant 0 : i32
    %c0_i32_1 = arith.constant 0 : i32
    return %c0_i32, %c0_i32_0 : i32, i32
  }
  func.func @transform_3(%arg0: i32) -> (i32, i32, i32) {
    %c0_i32 = arith.constant 0 : i32
    %c0_i32_0 = arith.constant 0 : i32
    %c0_i32_1 = arith.constant 0 : i32
    return %arg0, %c0_i32, %c0_i32_0 : i32, i32, i32
  }
}

</mosaic_0001>

<bundles_post_ra>
// kernel: tpu_custom_call.1
= control target key start
LH: loop header
LB: loop body
LE: loop exit
PB: predicated region body
PF: predicated region fallthrough
CT: control target
= control target key end

     0   :  { %s1045_s12 = smov 0   ;;  %s1172_s0 = inlined_call_operand.vmem [shape: f32[2,9,9,16], index: 0, kind: input, shape index: {}]   ;;  %s1173_s1 = inlined_call_operand.vmem [shape: f32[4,16,4], index: 1, kind: input, shape index: {}]   ;;  %s1174_s2 = inlined_call_operand.vmem [shape: f32[1,4], index: 2, kind: input, shape index: {}]   ;;  %s1175_s3 = inlined_call_operand.vmem [shape: f32[2,64,4], index: 3, kind: output, shape index: {}]  }
   0x1 LB: > { %s806_s13 = sadd.s32 4294967295, %s1023_s12   ;;  %p810_p0 = scmp.ge.s32.totalorder %s1023_s12, 1  ;;  %s1023_s12 = sphi %s1045_s12, %s13_s12  }
   0x2   : > { %p137_p1 = scmp.lt.s32.totalorder %s1023_s12, 3 }
   0x4   : > { %p138_p2 = pnand %p810_p0, %p137_p1 }
   0x5   : > { %v196_v0 = vld [vmem:[%s1173_s1] sm:$0xff] (!%p138_p2)  ;;  %v197_v1 = vld [vmem:[%s1173_s1 + $0x8] sm:$0xff] (!%p138_p2)  ;;  %p161_p3 = scmp.lt.s32.totalorder (!%p138_p2), %s806_s13, 1  ;;  %v823_v5 = vld [vmem:[%s1173_s1 + $0x10] sm:$0xff] (!%p138_p2)  ;;  %vm198_vm0 = vcmask (!%p138_p2), 130048   ;;  %vm344_vm1 = vcmask (!%p138_p2), 1046528  }
   0x6   : > { %141 = sbr.rel (%p138_p2) target bundleno = 265 (0x109), region = 32  ;;  %v833_v2 = vld [vmem:[%s1173_s1 + $0x20] sm:$0xff] (!%p138_p2)  ;;  %v960_v3 = vpack.c.bf16 (!%p138_p2), %v197_v1, %v196_v0  ;;  %v834_v4 = vld [vmem:[%s1173_s1 + $0x28] sm:$0xff] (!%p138_p2)  ;;  %v824_v6 = vld [vmem:[%s1173_s1 + $0x18] sm:$0xff] (!%p138_p2)  ;;  %vm742_vm2 = vcmask (!%p138_p2), 31744  }
   0x7   : > { %v968_v7 = vpack.c.bf16 (!%p138_p2), %v834_v4, %v833_v2  ;;  %v964_v8 = vpack.c.bf16 (!%p138_p2), %v824_v6, %v823_v5  ;;  %v843_v9 = vld [vmem:[%s1173_s1 + $0x30] sm:$0xff] (!%p138_p2)  ;;  %v844_v10 = vld [vmem:[%s1173_s1 + $0x38] sm:$0xff] (!%p138_p2)  ;;  %v814_v57 = vld [vmem:[%s1174_s2] ss:$0 sm:$0xff] (!%p138_p2) }
   0x8   : > { %961 = vmatprep.subr.bf16.mxu1 (!%p138_p2), %v960_v3  ;;  %v972_v11 = vpack.c.bf16 (!%p138_p2), %v844_v10, %v843_v9 }
   0x9   : > { %963 = vmatpush3.bf16.msra.mxu1 (!%p138_p2), %v960_v3  ;;  %969 = vmatprep.subr.bf16.mxu0 (!%p138_p2), %v968_v7 }
   0xa   : > { %971 = vmatpush3.bf16.msra.mxu0 (!%p138_p2), %v968_v7  ;;  %965 = vmatprep.subr.bf16.mxu1 (!%p138_p2), %v964_v8 }
   0xb   : > { %973 = vmatprep.subr.bf16.mxu0 (!%p138_p2), %v972_v11 }
   0xd   : > { %s1177_s13 = smov (!%p161_p3, %s806_s13), 1 }
   0xe   : > { %s1008_s30 = smul.u32 144, %s1177_s13  ;;  %s855_s9 = sshll.u32 %s1177_s13, 6 }
   0xf   : > { %s1151_s14 = scalar_lea.vmem %s1175_s3, %s855_s9 }
  0x10   : > { %s1083_s6 = scalar_lea.vmem %s1172_s0, %s1008_s30 }
  0x11   : > { %v171_v12 = vld [vmem:[%s1083_s6] sm:$0xff]  ;;  %v173_v13 = vld [vmem:[%s1083_s6 + $0x10] sm:$0xff]  ;;  %v172_v18 = vld [vmem:[%s1083_s6 + $0x8] sm:$0x1] }
  0x12   : > { %v175_v14 = vld [vmem:[%s1083_s6 + $0x20] sm:$0xff]  ;;  %900 = vmatprep.mubr.msk.f32.mxu1 %vm198_vm0, %v171_v12  ;;  %932 = vmatprep.mubr.msk.f32.mxu0 %vm198_vm0, %v173_v13  ;;  %v177_v15 = vld [vmem:[%s1083_s6 + $0x30] sm:$0xff]  ;;  %v174_v19 = vld [vmem:[%s1083_s6 + $0x18] sm:$0x1]  ;;  %v345_v20 = vrot.slane %v171_v12, 1  ;;  %v348_v22 = vrot.slane %v173_v13, 1 }
  0x13   : > { %901 = vmatmul.mubr.msk.f32.vlgmr.msra.gmra.mrb[0].mxu1 %vm198_vm0, %v173_v13  ;;  %933 = vmatmul.mubr.msk.f32.vlgmr.msra.gmra.mrb[0].mxu0 %vm198_vm0, %v175_v14  ;;  %v179_v16 = vld [vmem:[%s1083_s6 + $0x40] sm:$0xff]  ;;  %v181_v17 = vld [vmem:[%s1083_s6 + $0x50] sm:$0xff]  ;;  %v346_v24 = vrot.slane %v172_v18, 1  ;;  %v349_v25 = vrot.slane %v174_v19, 1  ;;  %v176_v26 = vld [vmem:[%s1083_s6 + $0x28] sm:$0x1] }
  0x14   : > { %967 = vmatpush3.bf16.msra.mxu1 %v964_v8  ;;  %975 = vmatpush3.bf16.msra.mxu0 %v972_v11  ;;  %v183_v21 = vld [vmem:[%s1083_s6 + $0x60] sm:$0xff]  ;;  %v185_v23 = vld [vmem:[%s1083_s6 + $0x70] sm:$0xff]  ;;  %v178_v27 = vld [vmem:[%s1083_s6 + $0x38] sm:$0x1]  ;;  %v351_v28 = vrot.slane %v175_v14, 1  ;;  %v352_v30 = vrot.slane %v176_v26, 1 }
  0x15   : > { %903 = vmatprep.mubr.msk.f32.mxu1 %vm198_vm0, %v175_v14  ;;  %935 = vmatprep.mubr.msk.f32.mxu0 %vm198_vm0, %v177_v15  ;;  %v187_v29 = vld [vmem:[%s1083_s6 + $0x80] sm:$0xff]  ;;  %v354_v31 = vrot.slane %v177_v15, 1  ;;  %v347_v32 = vsel %vm344_vm1, %v345_v20, %v346_v24  ;;  %v350_v33 = vsel %vm344_vm1, %v348_v22, %v349_v25  ;;  %v355_v34 = vrot.slane %v178_v27, 1  ;;  %v180_v35 = vld [vmem:[%s1083_s6 + $0x48] sm:$0x1] }
  0x16   : > { %v182_v36 = vld [vmem:[%s1083_s6 + $0x58] sm:$0x1]  ;;  %v357_v37 = vrot.slane %v179_v16, 1  ;;  %v353_v38 = vsel %vm344_vm1, %v351_v28, %v352_v30  ;;  %v358_v39 = vrot.slane %v180_v35, 1  ;;  %v360_v40 = vrot.slane %v181_v17, 1 }
  0x17   : > { %904 = vmatmul.mubr.msk.f32.gmra.mrb[2].mxu1 %vm198_vm0, %v177_v15  ;;  %936 = vmatmul.mubr.msk.f32.gmra.mrb[2].mxu0 %vm198_vm0, %v179_v16  ;;  %v356_v41 = vsel %vm344_vm1, %v354_v31, %v355_v34  ;;  %v361_v42 = vrot.slane %v182_v36, 1  ;;  %v184_v43 = vld [vmem:[%s1083_s6 + $0x68] sm:$0x1]  ;;  %v186_v44 = vld [vmem:[%s1083_s6 + $0x78] sm:$0x1]  ;;  %v363_v45 = vrot.slane %v183_v21, 1 }
  0x18   : > { %906 = vmatprep.mubr.msk.f32.mxu1 %vm198_vm0, %v179_v16  ;;  %938 = vmatprep.mubr.msk.f32.mxu0 %vm198_vm0, %v181_v17  ;;  %v359_v46 = vsel %vm344_vm1, %v357_v37, %v358_v39  ;;  %v364_v47 = vrot.slane %v184_v43, 1  ;;  %v366_v48 = vrot.slane %v185_v23, 1  ;;  %v367_v50 = vrot.slane %v186_v44, 1  ;;  %v188_v51 = vld [vmem:[%s1083_s6 + $0x88] sm:$0x1] }
  0x19   : > { %v362_v49 = vsel %vm344_vm1, %v360_v40, %v361_v42  ;;  %v621_v52 = vrot.slane %v187_v29, 1  ;;  %v622_v54 = vrot.slane %v188_v51, 1 }
  0x1a   : > { %v365_v53 = vsel %vm344_vm1, %v363_v45, %v364_v47  ;;  %v368_v55 = vsel %vm344_vm1, %v366_v48, %v367_v50 }
  0x1b   : > { %907 = vmatmul.mubr.msk.f32.gmra.mrb[4].mxu1 %vm198_vm0, %v181_v17  ;;  %939 = vmatmul.mubr.msk.f32.gmra.mrb[4].mxu0 %vm198_vm0, %v183_v21  ;;  %v623_v56 = vsel %vm344_vm1, %v621_v52, %v622_v54 }
  0x1c   : > { %909 = vmatprep.mubr.msk.f32.mxu1 %vm198_vm0, %v183_v21  ;;  %941 = vmatprep.mubr.msk.f32.mxu0 %vm198_vm0, %v185_v23 }
  0x1f   : > { %910 = vmatmul.mubr.msk.f32.gmra.mrb[6].mxu1 %vm198_vm0, %v185_v23  ;;  %942 = vmatmul.mubr.msk.f32.gmra.mrb[6].mxu0 %vm198_vm0, %v187_v29 }
  0x20   : > { %916 = vmatprep.mubr.msk.f32.mxu1 %vm198_vm0, %v347_v32  ;;  %948 = vmatprep.mubr.msk.f32.mxu0 %vm198_vm0, %v350_v33 }
  0x23   : > { %917 = vmatmul.mubr.msk.f32.vlgmr.msra.gmra.mrb[0].mxu1 %vm198_vm0, %v350_v33  ;;  %949 = vmatmul.mubr.msk.f32.vlgmr.msra.gmra.mrb[0].mxu0 %vm198_vm0, %v353_v38 }
  0x24   : > { %919 = vmatprep.mubr.msk.f32.mxu1 %vm198_vm0, %v353_v38  ;;  %951 = vmatprep.mubr.msk.f32.mxu0 %vm198_vm0, %v356_v41 }
  0x27   : > { %920 = vmatmul.mubr.msk.f32.gmra.mrb[2].mxu1 %vm198_vm0, %v356_v41  ;;  %952 = vmatmul.mubr.msk.f32.gmra.mrb[2].mxu0 %vm198_vm0, %v359_v46 }
  0x28   : > { %922 = vmatprep.mubr.msk.f32.mxu1 %vm198_vm0, %v359_v46  ;;  %954 = vmatprep.mubr.msk.f32.mxu0 %vm198_vm0, %v362_v49 }
  0x2b   : > { %923 = vmatmul.mubr.msk.f32.gmra.mrb[4].mxu1 %vm198_vm0, %v362_v49  ;;  %955 = vmatmul.mubr.msk.f32.gmra.mrb[4].mxu0 %vm198_vm0, %v365_v53 }
  0x2c   : > { %925 = vmatprep.mubr.msk.f32.mxu1 %vm198_vm0, %v365_v53  ;;  %957 = vmatprep.mubr.msk.f32.mxu0 %vm198_vm0, %v368_v55 }
  0x2f   : > { %926 = vmatmul.mubr.msk.f32.gmra.mrb[6].mxu1 %vm198_vm0, %v368_v55  ;;  %958 = vmatmul.mubr.msk.f32.gmra.mrb[6].mxu0 %vm198_vm0, %v623_v56 }
  0xf6   : > { %v918_v58 = vpop.f32.mrb[0].mxu1  ;;  %v950_v59 = vpop.f32.mrb[0].mxu0 }
  0xf7   : > { %v976_v60 = vadd.f32 %v918_v58, %v814_v57  ;;  %v454_v61 = vpop.f32.mrb[1].mxu1  ;;  %v695_v62 = vpop.f32.mrb[1].mxu0 }
  0xf8   : > { %v978_v63 = vadd.f32 %v814_v57, %v454_v61 }
  0xf9   : > { %v977_v0 = vadd.f32 %v976_v60, %v950_v59 }
  0xfa   : > { %v979_v1 = vadd.f32 %v978_v63, %v695_v62  ;;  %v921_v2 = vpop.f32.mrb[2].mxu1  ;;  %v953_v3 = vpop.f32.mrb[2].mxu0 }
  0xfb   : > { %744 = vst.msk [vmem:[%s1151_s14 + $0x8] sm:$0xff] %vm742_vm2, %v977_v0  ;;  %v980_v4 = vadd.f32 %v921_v2, %v814_v57  ;;  %v464_v5 = vpop.f32.mrb[3].mxu1  ;;  %v705_v6 = vpop.f32.mrb[3].mxu0 }
  0xfc   : > { %743 = vst.msk [vmem:[%s1151_s14] sm:$0xff] %vm742_vm2, %v979_v1  ;;  %v982_v7 = vadd.f32 %v814_v57, %v464_v5 }
  0xfd   : > { %v981_v8 = vadd.f32 %v980_v4, %v953_v3 }
  0xfe   : > { %v983_v9 = vadd.f32 %v982_v7, %v705_v6  ;;  %v924_v10 = vpop.f32.mrb[4].mxu1  ;;  %v956_v11 = vpop.f32.mrb[4].mxu0 }
  0xff   : > { %746 = vst.msk [vmem:[%s1151_s14 + $0x18] sm:$0xff] %vm742_vm2, %v981_v8  ;;  %v984_v12 = vadd.f32 %v924_v10, %v814_v57  ;;  %v474_v13 = vpop.f32.mrb[5].mxu1  ;;  %v715_v14 = vpop.f32.mrb[5].mxu0 }
 0x100   : > { %745 = vst.msk [vmem:[%s1151_s14 + $0x10] sm:$0xff] %vm742_vm2, %v983_v9  ;;  %v986_v15 = vadd.f32 %v814_v57, %v474_v13 }
 0x101   : > { %v985_v16 = vadd.f32 %v984_v12, %v956_v11 }
 0x102   : > { %v987_v17 = vadd.f32 %v986_v15, %v715_v14  ;;  %v927_v18 = vpop.f32.mrb[6].mxu1  ;;  %v959_v19 = vpop.f32.mrb[6].mxu0 }
 0x103   : > { %748 = vst.msk [vmem:[%s1151_s14 + $0x28] sm:$0xff] %vm742_vm2, %v985_v16  ;;  %v988_v20 = vadd.f32 %v927_v18, %v814_v57  ;;  %v484_v21 = vpop.f32.mrb[7].mxu1  ;;  %v725_v22 = vpop.f32.mrb[7].mxu0 }
 0x104   : > { %747 = vst.msk [vmem:[%s1151_s14 + $0x20] sm:$0xff] %vm742_vm2, %v987_v17  ;;  %v990_v23 = vadd.f32 %v814_v57, %v484_v21 }
 0x105   : > { %v989_v24 = vadd.f32 %v988_v20, %v959_v19 }
 0x106   : > { %v991_v25 = vadd.f32 %v990_v23, %v725_v22 }
 0x107   : > { %750 = vst.msk [vmem:[%s1151_s14 + $0x38] sm:$0xff] %vm742_vm2, %v989_v24 }
 0x108   : > { %749 = vst.msk [vmem:[%s1151_s14 + $0x30] sm:$0xff] %vm742_vm2, %v991_v25 }
 0x109 PF: > { %s13_s12 = sadd.s32 1, %s1023_s12  }
 0x10a   : > { %p10_p4 = scmp.ge.s32.totalorder %s13_s12, 4  }
 0x10c   :  { %12 = sbr.rel (!%p10_p4) target bundleno = 1 (0x1), region = 65 }

</bundles_post_ra>
